<compile_context>
chip_gen: v5e
topology: v5e:2x2
jax: 0.10.0
libtpu: 0.0.40
codegen_flags: <defaults>
</compile_context>

<pallas_src>
import functools

import jax
import jax.numpy as jnp
from jax.experimental import pallas as pl
from jax.experimental.pallas import tpu as pltpu


KW = 3  # coupling conv kernel width (kw=3 in the PyTorch module)


def make_flow_kernel(nsq, ncha, kw=KW):
    """Pallas kernel computing one Flow forward for one sample (C, T) tile."""
    nh = nsq // 2
    pad = kw // 2

    def shift_lanes(x, d):
        # y[:, t] = x[:, t + d], zero padded out of range (time on lanes).
        if d == 0:
            return x
        C, T = x.shape
        z = jnp.zeros((C, abs(d)), x.dtype)
        if d > 0:
            return jnp.concatenate([x[:, d:], z], axis=1)
        return jnp.concatenate([z, x[:, : T + d]], axis=1)

    def shifted_stack(x):
        # (C, T) -> (kw*C, T); row k*C + c holds x[c, t + k - pad].
        return jnp.concatenate([shift_lanes(x, k - pad) for k in range(kw)], axis=0)

    def kernel(h_ref, mixw_ref, scale_ref, m_ref, wg_ref, bg_ref,
               w1_ref, b1_ref, w2_ref, b2_ref, hout_ref, ld_ref):
        # Layout: channels on sublanes, time on lanes (lane-dense stores along T).
        x = h_ref[0]                                                   # (nsq, T)

        # ---- InvConv: 1x1 channel mix as a single MXU matmul -----------------
        hm = jnp.dot(mixw_ref[...], x, preferred_element_type=jnp.float32)

        # ---- ActNorm apply (data-init stats precomputed in the wrapper) ------
        hn = scale_ref[...] * (hm + m_ref[...])                        # (nsq, T)
        h1 = hn[:nh, :]
        h2 = hn[nh:, :]

        # ---- AffineCoupling --------------------------------------------------
        # Speaker-conditioned grouped (depthwise fan-out R) conv folded into one
        # matmul against the pre-expanded per-sample weight (ncha, kw*nh).
        xs = shifted_stack(h1)                                         # (kw*nh, T)
        g = jnp.dot(wg_ref[0], xs, preferred_element_type=jnp.float32) + bg_ref[0]
        a = jnp.maximum(g, 0.0)

        # 1x1 conv.
        c1 = jnp.dot(w1_ref[...], a, preferred_element_type=jnp.float32) + b1_ref[...]
        a2 = jnp.maximum(c1, 0.0)

        # kw-wide conv fused into ONE matmul with K = kw*ncha.
        ys = shifted_stack(a2)                                         # (kw*ncha, T)
        c2 = jnp.dot(w2_ref[...], ys, preferred_element_type=jnp.float32) + b2_ref[...]

        s = jax.nn.sigmoid(c2[:nh, :] + 2.0) + 1e-7                    # gate (EUP)
        mc = c2[nh:, :]
        h2o = s * (h2 + mc)

        hout_ref[0] = jnp.concatenate([h1, h2o], axis=0)               # (nsq, T)
        ld_ref[...] = jnp.sum(jnp.log(s), axis=(0, 1), keepdims=True).reshape(1, 1, 1)

    return kernel


def flow_forward(h, emb, p, *, ncha, kw=KW):
    """One Flow forward. h: (B, nsq, T) NCL. Returns ((B, nsq, T), (B,))."""
    B, nsq, T = h.shape
    nh = nsq // 2
    assert ncha % nh == 0
    h = h.astype(jnp.float32)

    # ---- InvConv log-det + ActNorm data-init stats (exact, tiny reductions) ----
    # std/mean of W@h over (batch, time) derived from per-channel mean/covariance
    # of h — algebraically identical to the PyTorch first-forward data init.
    n = B * T
    mixw = p["mixw"]
    mean_h = jnp.mean(h, axis=(0, 2))                                  # (nsq,)
    hc = h - mean_h[None, :, None]
    cov = jnp.einsum("bct,bdt->cd", hc, hc) / (n - 1)                  # unbiased
    mean_y = mixw @ mean_h
    var_y = jnp.einsum("oc,cd,od->o", mixw, cov, mixw)
    std_y = jnp.sqrt(jnp.maximum(var_y, 0.0))
    logs = jnp.log(1.0 / (std_y + 1e-7))
    m = -mean_y
    scale = jnp.exp(logs)
    ld_mix = p["ws_sum"] * T                                           # scalar
    ld_norm = jnp.sum(logs) * T                                        # scalar

    # ---- speaker-conditioned depthwise weights, expanded for a single matmul ----
    aw = emb @ p["W_aw"].T + p["b_aw"]                                 # (B, ncha*kw)
    wdw = aw.reshape(B, ncha, kw)                                      # w[b, oc, k]
    bg = (emb @ p["W_ab"].T + p["b_ab"])[:, :, None]                   # (B, ncha, 1)
    R = ncha // nh
    onehot = (jnp.arange(ncha)[:, None] // R ==
              jnp.arange(nh)[None, :]).astype(jnp.float32)             # (ncha, nh)
    # Wg[b, oc, k*nh + ic] = w[b, oc, k] * [ic == oc // R]
    Wg = (wdw[:, :, :, None] * onehot[None, :, None, :]).reshape(B, ncha, kw * nh)

    kernel = make_flow_kernel(nsq, ncha, kw)
    full2 = lambda shp: pl.BlockSpec(shp, lambda b: (0, 0))
    per_b = lambda shp: pl.BlockSpec(shp, lambda b: (b, 0, 0))

    hout, ld = pl.pallas_call(
        kernel,
        grid=(B,),
        out_shape=(jax.ShapeDtypeStruct((B, nsq, T), jnp.float32),
                   jax.ShapeDtypeStruct((B, 1, 1), jnp.float32)),
        in_specs=[per_b((1, nsq, T)),           # h
                  full2((nsq, nsq)),            # InvConv weight
                  full2((nsq, 1)),              # ActNorm scale = exp(logs)
                  full2((nsq, 1)),              # ActNorm m
                  per_b((1, ncha, kw * nh)),    # expanded per-sample depthwise W
                  per_b((1, ncha, 1)),          # per-sample depthwise bias
                  full2((ncha, ncha)),          # conv1 (1x1) weight
                  full2((ncha, 1)),             # conv1 bias
                  full2((2 * nh, kw * ncha)),   # conv2 weight (kw fused into K)
                  full2((2 * nh, 1))],          # conv2 bias
        out_specs=(per_b((1, nsq, T)),
                   per_b((1, 1, 1))),
        compiler_params=pltpu.CompilerParams(dimension_semantics=("parallel",)),
    )(h, mixw, scale[:, None], m[:, None], Wg, bg,
      p["W1"], p["b1"][:, None], p["W2r"], p["b2"][:, None])

    return hout, ld.reshape(B) + ld_mix + ld_norm


# -------------------------- glue: squeeze / model loop --------------------------

def squeeze(h, f):
    """(B, C, T) -> (B, C*f, T//f) exactly as the PyTorch Squeezer."""
    B, C, T = h.shape
    h = h.reshape(B, C, T // f, f)
    h = jnp.transpose(h, (0, 1, 3, 2))
    return h.reshape(B, C * f, T // f)


def model_forward(params, h, s, *, sqfactor, ncha):
    """Model.forward: h (B, L) f32, s (B,) int. Returns (h_out (B, L), logdet (B,))."""
    B, L = h.shape
    hh = h[:, None, :].astype(jnp.float32)          # unsqueeze(1)
    emb = params["embedding"][s]                    # (B, semb)
    log_det = jnp.zeros((B,), jnp.float32)
    for block in params["blocks"]:
        hh = squeeze(hh, sqfactor)
        for flow_p in block:
            hh, ld = flow_forward(hh, emb, flow_p, ncha=ncha)
            log_det = log_det + ld
    return hh.reshape(B, L), log_det


# -------------------------- deterministic parameter init --------------------------

def _init_invconv(key, nsq):
    k1, k2, k3 = jax.random.split(key, 3)
    w_l = jax.random.normal(k1, (nsq, nsq), jnp.float32) * 0.1
    w_u = jax.random.normal(k2, (nsq, nsq), jnp.float32) * 0.1
    w_s = jax.random.normal(k3, (nsq,), jnp.float32) * 0.1
    l_mask = jnp.tril(jnp.ones((nsq, nsq), jnp.float32), -1)
    u_mask = jnp.triu(jnp.ones((nsq, nsq), jnp.float32), 1)
    eye = jnp.eye(nsq, dtype=jnp.float32)
    w_p = jnp.eye(nsq, dtype=jnp.float32)           # identity permutation
    weight = w_p @ (w_l * l_mask + eye) @ (w_u * u_mask + jnp.diag(jnp.exp(w_s)))
    return weight.astype(jnp.float32), jnp.sum(w_s)


def _init_coupling(key, nh, ncha, semb, kw=KW):
    ks = jax.random.split(key, 8)
    W_aw = jax.random.normal(ks[0], (ncha * kw, semb), jnp.float32) / jnp.sqrt(float(semb))
    b_aw = jax.random.normal(ks[1], (ncha * kw,), jnp.float32) * 0.05
    W_ab = jax.random.normal(ks[2], (ncha, semb), jnp.float32) / jnp.sqrt(float(semb))
    b_ab = jax.random.normal(ks[3], (ncha,), jnp.float32) * 0.05
    W1 = jax.random.normal(ks[4], (ncha, ncha), jnp.float32) / jnp.sqrt(float(ncha))
    b1 = jax.random.normal(ks[5], (ncha,), jnp.float32) * 0.05
    # NOTE: the original module zero-inits the last conv; small nonzero values are
    # used here so the kernel compute path is actually exercised in the demo.
    W2 = jax.random.normal(ks[6], (2 * nh, ncha, kw), jnp.float32) * 0.02
    b2 = jax.random.normal(ks[7], (2 * nh,), jnp.float32) * 0.02
    # repack conv2 for the fused (2*nh, kw*ncha) @ (kw*ncha, T) matmul
    W2r = jnp.transpose(W2, (0, 2, 1)).reshape(2 * nh, kw * ncha)
    return dict(W_aw=W_aw, b_aw=b_aw, W_ab=W_ab, b_ab=b_ab,
                W1=W1, b1=b1, W2r=W2r, b2=b2)


def init_params(key, sqfactor, nblocks, nflows, ncha, ntargets, semb):
    keys = jax.random.split(key, nblocks * nflows * 2 + 1)
    params = {"blocks": []}
    nsq = sqfactor
    ki = 0
    for _ in range(nblocks):
        flows = []
        for _ in range(nflows):
            mixw, ws_sum = _init_invconv(keys[ki], nsq); ki += 1
            p = _init_coupling(keys[ki], nsq // 2, ncha, semb); ki += 1
            p["mixw"] = mixw
            p["ws_sum"] = ws_sum
            flows.append(p)
        params["blocks"].append(flows)
        nsq *= sqfactor
    params["embedding"] = jax.random.normal(keys[ki], (ntargets, semb), jnp.float32) * 0.1
    return params


if __name__ == "__main__":
    sqfactor, nblocks, nflows, ncha, ntargets, semb = 2, 2, 2, 32, 4, 128
    B, L = 2, 64   # lchunk must be divisible by sqfactor**nblocks

    key = jax.random.PRNGKey(0)
    pkey, xkey, skey = jax.random.split(key, 3)
    params = init_params(pkey, sqfactor, nblocks, nflows, ncha, ntargets, semb)

    h = jax.random.normal(xkey, (B, L), jnp.float32)
    s = jax.random.randint(skey, (B,), 0, ntargets)

    fwd = jax.jit(functools.partial(model_forward, sqfactor=sqfactor, ncha=ncha))
    h_out, log_det = fwd(params, h, s)
    jax.block_until_ready((h_out, log_det))

    assert h_out.shape == (B, L) and log_det.shape == (B,)
    assert bool(jnp.all(jnp.isfinite(h_out))) and bool(jnp.all(jnp.isfinite(log_det)))
    print("KERNEL_OK")
</pallas_src>

<mosaic_0001>
module attributes {stable_mosaic.version = 11 : i64} {
  func.func @kernel(%arg0: i32, %arg1: memref<1x2x32xf32, #tpu.memory_space<vmem>>, %arg2: memref<2x2xf32, #tpu.memory_space<vmem>>, %arg3: memref<2x1xf32, #tpu.memory_space<vmem>>, %arg4: memref<2x1xf32, #tpu.memory_space<vmem>>, %arg5: memref<1x32x3xf32, #tpu.memory_space<vmem>>, %arg6: memref<1x32x1xf32, #tpu.memory_space<vmem>>, %arg7: memref<32x32xf32, #tpu.memory_space<vmem>>, %arg8: memref<32x1xf32, #tpu.memory_space<vmem>>, %arg9: memref<2x96xf32, #tpu.memory_space<vmem>>, %arg10: memref<2x1xf32, #tpu.memory_space<vmem>>, %arg11: memref<1x2x32xf32, #tpu.memory_space<vmem>>, %arg12: memref<1x1x1xf32, #tpu.memory_space<vmem>>) attributes {dimension_semantics = [#tpu.dimension_semantics<parallel>], iteration_bounds = array<i64: 2>, scalar_prefetch = 0 : i64, scratch_operands = 0 : i64, tpu.core_type = #tpu.core_type<tc>, window_params = [{transform_indices = @transform_0, window_bounds = array<i64: 1, 2, 32>}, {pipeline_mode = #tpu.pipeline_mode<synchronous>, transform_indices = @transform_1, window_bounds = array<i64: 2, 2>}, {pipeline_mode = #tpu.pipeline_mode<synchronous>, transform_indices = @transform_2, window_bounds = array<i64: 2, 1>}, {pipeline_mode = #tpu.pipeline_mode<synchronous>, transform_indices = @transform_3, window_bounds = array<i64: 2, 1>}, {transform_indices = @transform_4, window_bounds = array<i64: 1, 32, 3>}, {transform_indices = @transform_5, window_bounds = array<i64: 1, 32, 1>}, {pipeline_mode = #tpu.pipeline_mode<synchronous>, transform_indices = @transform_6, window_bounds = array<i64: 32, 32>}, {pipeline_mode = #tpu.pipeline_mode<synchronous>, transform_indices = @transform_7, window_bounds = array<i64: 32, 1>}, {pipeline_mode = #tpu.pipeline_mode<synchronous>, transform_indices = @transform_8, window_bounds = array<i64: 2, 96>}, {pipeline_mode = #tpu.pipeline_mode<synchronous>, transform_indices = @transform_9, window_bounds = array<i64: 2, 1>}, {transform_indices = @transform_10, window_bounds = array<i64: 1, 2, 32>}, {transform_indices = @transform_11, window_bounds = array<i64: 1, 1, 1>}]} {
    %c0 = arith.constant 0 : index
    %c0_0 = arith.constant 0 : index
    %c0_1 = arith.constant 0 : index
    %0 = vector.load %arg1[%c0, %c0_0, %c0_1] : memref<1x2x32xf32, #tpu.memory_space<vmem>>, vector<1x2x32xf32>
    %1 = vector.shape_cast %0 : vector<1x2x32xf32> to vector<2x32xf32>
    %c0_2 = arith.constant 0 : index
    %c0_3 = arith.constant 0 : index
    %2 = vector.load %arg2[%c0_2, %c0_3] : memref<2x2xf32, #tpu.memory_space<vmem>>, vector<2x2xf32>
    %cst = arith.constant dense<0.000000e+00> : vector<2x32xf32>
    %3 = tpu.matmul %2, %1, %cst {dimension_numbers = #tpu.dot_dimension_numbers<[1], [0], [0], [1], [0, 0, 1, 1], [], []>} : vector<2x2xf32>, vector<2x32xf32>, vector<2x32xf32> -> vector<2x32xf32>
    %c0_4 = arith.constant 0 : index
    %c0_5 = arith.constant 0 : index
    %4 = vector.load %arg3[%c0_4, %c0_5] : memref<2x1xf32, #tpu.memory_space<vmem>>, vector<2x1xf32>
    %c0_6 = arith.constant 0 : index
    %c0_7 = arith.constant 0 : index
    %5 = vector.load %arg4[%c0_6, %c0_7] : memref<2x1xf32, #tpu.memory_space<vmem>>, vector<2x1xf32>
    %6 = vector.broadcast %5 : vector<2x1xf32> to vector<2x32xf32>
    %7 = arith.addf %3, %6 : vector<2x32xf32>
    %8 = vector.broadcast %4 : vector<2x1xf32> to vector<2x32xf32>
    %9 = arith.mulf %8, %7 : vector<2x32xf32>
    %10 = vector.extract_strided_slice %9 {offsets = [0, 0], sizes = [1, 32], strides = [1, 1]} : vector<2x32xf32> to vector<1x32xf32>
    %11 = vector.extract_strided_slice %9 {offsets = [1, 0], sizes = [1, 32], strides = [1, 1]} : vector<2x32xf32> to vector<1x32xf32>
    %cst_8 = arith.constant 0.000000e+00 : f32
    %12 = vector.broadcast %cst_8 : f32 to vector<1x1xf32>
    %13 = vector.extract_strided_slice %10 {offsets = [0, 0], sizes = [1, 31], strides = [1, 1]} : vector<1x32xf32> to vector<1x31xf32>
    %14 = tpu.concatenate %12, %13 in 1 : vector<1x1xf32>, vector<1x31xf32> -> vector<1x32xf32>
    %cst_9 = arith.constant 0.000000e+00 : f32
    %15 = vector.broadcast %cst_9 : f32 to vector<1x1xf32>
    %16 = vector.extract_strided_slice %10 {offsets = [0, 1], sizes = [1, 31], strides = [1, 1]} : vector<1x32xf32> to vector<1x31xf32>
    %17 = tpu.concatenate %16, %15 in 1 : vector<1x31xf32>, vector<1x1xf32> -> vector<1x32xf32>
    %18 = tpu.concatenate %14, %10, %17 in 0 : vector<1x32xf32>, vector<1x32xf32>, vector<1x32xf32> -> vector<3x32xf32>
    %c0_10 = arith.constant 0 : index
    %c0_11 = arith.constant 0 : index
    %c0_12 = arith.constant 0 : index
    %19 = vector.load %arg5[%c0_10, %c0_11, %c0_12] : memref<1x32x3xf32, #tpu.memory_space<vmem>>, vector<1x32x3xf32>
    %20 = vector.shape_cast %19 : vector<1x32x3xf32> to vector<32x3xf32>
    %cst_13 = arith.constant dense<0.000000e+00> : vector<32x32xf32>
    %21 = tpu.matmul %20, %18, %cst_13 {dimension_numbers = #tpu.dot_dimension_numbers<[1], [0], [0], [1], [0, 0, 1, 1], [], []>} : vector<32x3xf32>, vector<3x32xf32>, vector<32x32xf32> -> vector<32x32xf32>
    %c0_14 = arith.constant 0 : index
    %c0_15 = arith.constant 0 : index
    %c0_16 = arith.constant 0 : index
    %22 = vector.load %arg6[%c0_14, %c0_15, %c0_16] : memref<1x32x1xf32, #tpu.memory_space<vmem>>, vector<1x32x1xf32>
    %23 = vector.shape_cast %22 : vector<1x32x1xf32> to vector<32x1xf32>
    %24 = vector.broadcast %23 : vector<32x1xf32> to vector<32x32xf32>
    %25 = arith.addf %21, %24 : vector<32x32xf32>
    %cst_17 = arith.constant 0.000000e+00 : f32
    %26 = vector.broadcast %cst_17 : f32 to vector<32x32xf32>
    %27 = arith.maximumf %25, %26 : vector<32x32xf32>
    %c0_18 = arith.constant 0 : index
    %c0_19 = arith.constant 0 : index
    %28 = vector.load %arg7[%c0_18, %c0_19] : memref<32x32xf32, #tpu.memory_space<vmem>>, vector<32x32xf32>
    %cst_20 = arith.constant dense<0.000000e+00> : vector<32x32xf32>
    %29 = tpu.matmul %28, %27, %cst_20 {dimension_numbers = #tpu.dot_dimension_numbers<[1], [0], [0], [1], [0, 0, 1, 1], [], []>} : vector<32x32xf32>, vector<32x32xf32>, vector<32x32xf32> -> vector<32x32xf32>
    %c0_21 = arith.constant 0 : index
    %c0_22 = arith.constant 0 : index
    %30 = vector.load %arg8[%c0_21, %c0_22] : memref<32x1xf32, #tpu.memory_space<vmem>>, vector<32x1xf32>
    %31 = vector.broadcast %30 : vector<32x1xf32> to vector<32x32xf32>
    %32 = arith.addf %29, %31 : vector<32x32xf32>
    %cst_23 = arith.constant 0.000000e+00 : f32
    %33 = vector.broadcast %cst_23 : f32 to vector<32x32xf32>
    %34 = arith.maximumf %32, %33 : vector<32x32xf32>
    %cst_24 = arith.constant 0.000000e+00 : f32
    %35 = vector.broadcast %cst_24 : f32 to vector<32x1xf32>
    %36 = vector.extract_strided_slice %34 {offsets = [0, 0], sizes = [32, 31], strides = [1, 1]} : vector<32x32xf32> to vector<32x31xf32>
    %37 = tpu.concatenate %35, %36 in 1 : vector<32x1xf32>, vector<32x31xf32> -> vector<32x32xf32>
    %cst_25 = arith.constant 0.000000e+00 : f32
    %38 = vector.broadcast %cst_25 : f32 to vector<32x1xf32>
    %39 = vector.extract_strided_slice %34 {offsets = [0, 1], sizes = [32, 31], strides = [1, 1]} : vector<32x32xf32> to vector<32x31xf32>
    %40 = tpu.concatenate %39, %38 in 1 : vector<32x31xf32>, vector<32x1xf32> -> vector<32x32xf32>
    %41 = tpu.concatenate %37, %34, %40 in 0 : vector<32x32xf32>, vector<32x32xf32>, vector<32x32xf32> -> vector<96x32xf32>
    %c0_26 = arith.constant 0 : index
    %c0_27 = arith.constant 0 : index
    %42 = vector.load %arg9[%c0_26, %c0_27] : memref<2x96xf32, #tpu.memory_space<vmem>>, vector<2x96xf32>
    %cst_28 = arith.constant dense<0.000000e+00> : vector<2x32xf32>
    %43 = tpu.matmul %42, %41, %cst_28 {dimension_numbers = #tpu.dot_dimension_numbers<[1], [0], [0], [1], [0, 0, 1, 1], [], []>} : vector<2x96xf32>, vector<96x32xf32>, vector<2x32xf32> -> vector<2x32xf32>
    %c0_29 = arith.constant 0 : index
    %c0_30 = arith.constant 0 : index
    %44 = vector.load %arg10[%c0_29, %c0_30] : memref<2x1xf32, #tpu.memory_space<vmem>>, vector<2x1xf32>
    %45 = vector.broadcast %44 : vector<2x1xf32> to vector<2x32xf32>
    %46 = arith.addf %43, %45 : vector<2x32xf32>
    %47 = vector.extract_strided_slice %46 {offsets = [0, 0], sizes = [1, 32], strides = [1, 1]} : vector<2x32xf32> to vector<1x32xf32>
    %cst_31 = arith.constant 2.000000e+00 : f32
    %48 = vector.broadcast %cst_31 : f32 to vector<1x32xf32>
    %49 = arith.addf %47, %48 : vector<1x32xf32>
    %50 = arith.negf %49 : vector<1x32xf32>
    %51 = math.exp %50 : vector<1x32xf32>
    %cst_32 = arith.constant 1.000000e+00 : f32
    %52 = vector.broadcast %cst_32 : f32 to vector<1x32xf32>
    %53 = arith.addf %52, %51 : vector<1x32xf32>
    %54 = arith.divf %52, %53 : vector<1x32xf32>
    %cst_33 = arith.constant 1.000000e-07 : f32
    %55 = vector.broadcast %cst_33 : f32 to vector<1x32xf32>
    %56 = arith.addf %54, %55 : vector<1x32xf32>
    %57 = vector.extract_strided_slice %46 {offsets = [1, 0], sizes = [1, 32], strides = [1, 1]} : vector<2x32xf32> to vector<1x32xf32>
    %58 = arith.addf %11, %57 : vector<1x32xf32>
    %59 = arith.mulf %56, %58 : vector<1x32xf32>
    %60 = tpu.concatenate %10, %59 in 0 : vector<1x32xf32>, vector<1x32xf32> -> vector<2x32xf32>
    %c0_34 = arith.constant 0 : index
    %c0_35 = arith.constant 0 : index
    %c0_36 = arith.constant 0 : index
    %61 = vector.load %arg11[%c0_34, %c0_35, %c0_36] : memref<1x2x32xf32, #tpu.memory_space<vmem>>, vector<1x2x32xf32>
    %62 = vector.shape_cast %61 : vector<1x2x32xf32> to vector<2x32xf32>
    %63 = vector.shape_cast %60 : vector<2x32xf32> to vector<1x2x32xf32>
    tpu.vector_store %arg11[%c0_34, %c0_35, %c0_36], %63 {strides = array<i32>} : memref<1x2x32xf32, #tpu.memory_space<vmem>>, vector<1x2x32xf32>,
    %64 = math.log %56 : vector<1x32xf32>
    %65 = vector.shape_cast %64 : vector<1x32xf32> to vector<1x1x32xf32>
    %cst_37 = arith.constant dense<0.000000e+00> : vector<1xf32>
    %66 = vector.multi_reduction <add>, %65, %cst_37 [1, 2] : vector<1x1x32xf32> to vector<1xf32>
    %67 = vector.shape_cast %66 : vector<1xf32> to vector<1x1x1xf32>
    %68 = vector.extract %67[0, 0, 0] : f32 from vector<1x1x1xf32>
    %69 = vector.broadcast %68 : f32 to vector<1x1xf32>
    %70 = vector.shape_cast %69 : vector<1x1xf32> to vector<1x1x1xf32>
    %c0_38 = arith.constant 0 : index
    %c0_39 = arith.constant 0 : index
    %c0_40 = arith.constant 0 : index
    %71 = vector.load %arg12[%c0_38, %c0_39, %c0_40] : memref<1x1x1xf32, #tpu.memory_space<vmem>>, vector<1x1x1xf32>
    tpu.vector_store %arg12[%c0_38, %c0_39, %c0_40], %70 {strides = array<i32>} : memref<1x1x1xf32, #tpu.memory_space<vmem>>, vector<1x1x1xf32>,
    return
  }
  func.func @transform_0(%arg0: i32) -> (i32, i32, i32) {
    %c0_i32 = arith.constant 0 : i32
    %c0_i32_0 = arith.constant 0 : i32
    %c0_i32_1 = arith.constant 0 : i32
    return %arg0, %c0_i32, %c0_i32_0 : i32, i32, i32
  }
  func.func @transform_1(%arg0: i32) -> (i32, i32) {
    %c0_i32 = arith.constant 0 : i32
    %c0_i32_0 = arith.constant 0 : i32
    %c0_i32_1 = arith.constant 0 : i32
    return %c0_i32, %c0_i32_0 : i32, i32
  }
  func.func @transform_2(%arg0: i32) -> (i32, i32) {
    %c0_i32 = arith.constant 0 : i32
    %c0_i32_0 = arith.constant 0 : i32
    %c0_i32_1 = arith.constant 0 : i32
    return %c0_i32, %c0_i32_0 : i32, i32
  }
  func.func @transform_3(%arg0: i32) -> (i32, i32) {
    %c0_i32 = arith.constant 0 : i32
    %c0_i32_0 = arith.constant 0 : i32
    %c0_i32_1 = arith.constant 0 : i32
    return %c0_i32, %c0_i32_0 : i32, i32
  }
  func.func @transform_4(%arg0: i32) -> (i32, i32, i32) {
    %c0_i32 = arith.constant 0 : i32
    %c0_i32_0 = arith.constant 0 : i32
    %c0_i32_1 = arith.constant 0 : i32
    return %arg0, %c0_i32, %c0_i32_0 : i32, i32, i32
  }
  func.func @transform_5(%arg0: i32) -> (i32, i32, i32) {
    %c0_i32 = arith.constant 0 : i32
    %c0_i32_0 = arith.constant 0 : i32
    %c0_i32_1 = arith.constant 0 : i32
    return %arg0, %c0_i32, %c0_i32_0 : i32, i32, i32
  }
  func.func @transform_6(%arg0: i32) -> (i32, i32) {
    %c0_i32 = arith.constant 0 : i32
    %c0_i32_0 = arith.constant 0 : i32
    %c0_i32_1 = arith.constant 0 : i32
    return %c0_i32, %c0_i32_0 : i32, i32
  }
  func.func @transform_7(%arg0: i32) -> (i32, i32) {
    %c0_i32 = arith.constant 0 : i32
    %c0_i32_0 = arith.constant 0 : i32
    %c0_i32_1 = arith.constant 0 : i32
    return %c0_i32, %c0_i32_0 : i32, i32
  }
  func.func @transform_8(%arg0: i32) -> (i32, i32) {
    %c0_i32 = arith.constant 0 : i32
    %c0_i32_0 = arith.constant 0 : i32
    %c0_i32_1 = arith.constant 0 : i32
    return %c0_i32, %c0_i32_0 : i32, i32
  }
  func.func @transform_9(%arg0: i32) -> (i32, i32) {
    %c0_i32 = arith.constant 0 : i32
    %c0_i32_0 = arith.constant 0 : i32
    %c0_i32_1 = arith.constant 0 : i32
    return %c0_i32, %c0_i32_0 : i32, i32
  }
  func.func @transform_10(%arg0: i32) -> (i32, i32, i32) {
    %c0_i32 = arith.constant 0 : i32
    %c0_i32_0 = arith.constant 0 : i32
    %c0_i32_1 = arith.constant 0 : i32
    return %arg0, %c0_i32, %c0_i32_0 : i32, i32, i32
  }
  func.func @transform_11(%arg0: i32) -> (i32, i32, i32) {
    %c0_i32 = arith.constant 0 : i32
    %c0_i32_0 = arith.constant 0 : i32
    %c0_i32_1 = arith.constant 0 : i32
    return %arg0, %c0_i32, %c0_i32_0 : i32, i32, i32
  }
}

module attributes {stable_mosaic.version = 11 : i64} {
  func.func @kernel(%arg0: i32, %arg1: memref<1x4x16xf32, #tpu.memory_space<vmem>>, %arg2: memref<4x4xf32, #tpu.memory_space<vmem>>, %arg3: memref<4x1xf32, #tpu.memory_space<vmem>>, %arg4: memref<4x1xf32, #tpu.memory_space<vmem>>, %arg5: memref<1x32x6xf32, #tpu.memory_space<vmem>>, %arg6: memref<1x32x1xf32, #tpu.memory_space<vmem>>, %arg7: memref<32x32xf32, #tpu.memory_space<vmem>>, %arg8: memref<32x1xf32, #tpu.memory_space<vmem>>, %arg9: memref<4x96xf32, #tpu.memory_space<vmem>>, %arg10: memref<4x1xf32, #tpu.memory_space<vmem>>, %arg11: memref<1x4x16xf32, #tpu.memory_space<vmem>>, %arg12: memref<1x1x1xf32, #tpu.memory_space<vmem>>) attributes {dimension_semantics = [#tpu.dimension_semantics<parallel>], iteration_bounds = array<i64: 2>, scalar_prefetch = 0 : i64, scratch_operands = 0 : i64, tpu.core_type = #tpu.core_type<tc>, window_params = [{transform_indices = @transform_0, window_bounds = array<i64: 1, 4, 16>}, {pipeline_mode = #tpu.pipeline_mode<synchronous>, transform_indices = @transform_1, window_bounds = array<i64: 4, 4>}, {pipeline_mode = #tpu.pipeline_mode<synchronous>, transform_indices = @transform_2, window_bounds = array<i64: 4, 1>}, {pipeline_mode = #tpu.pipeline_mode<synchronous>, transform_indices = @transform_3, window_bounds = array<i64: 4, 1>}, {transform_indices = @transform_4, window_bounds = array<i64: 1, 32, 6>}, {transform_indices = @transform_5, window_bounds = array<i64: 1, 32, 1>}, {pipeline_mode = #tpu.pipeline_mode<synchronous>, transform_indices = @transform_6, window_bounds = array<i64: 32, 32>}, {pipeline_mode = #tpu.pipeline_mode<synchronous>, transform_indices = @transform_7, window_bounds = array<i64: 32, 1>}, {pipeline_mode = #tpu.pipeline_mode<synchronous>, transform_indices = @transform_8, window_bounds = array<i64: 4, 96>}, {pipeline_mode = #tpu.pipeline_mode<synchronous>, transform_indices = @transform_9, window_bounds = array<i64: 4, 1>}, {transform_indices = @transform_10, window_bounds = array<i64: 1, 4, 16>}, {transform_indices = @transform_11, window_bounds = array<i64: 1, 1, 1>}]} {
    %c0 = arith.constant 0 : index
    %c0_0 = arith.constant 0 : index
    %c0_1 = arith.constant 0 : index
    %0 = vector.load %arg1[%c0, %c0_0, %c0_1] : memref<1x4x16xf32, #tpu.memory_space<vmem>>, vector<1x4x16xf32>
    %1 = vector.shape_cast %0 : vector<1x4x16xf32> to vector<4x16xf32>
    %c0_2 = arith.constant 0 : index
    %c0_3 = arith.constant 0 : index
    %2 = vector.load %arg2[%c0_2, %c0_3] : memref<4x4xf32, #tpu.memory_space<vmem>>, vector<4x4xf32>
    %cst = arith.constant dense<0.000000e+00> : vector<4x16xf32>
    %3 = tpu.matmul %2, %1, %cst {dimension_numbers = #tpu.dot_dimension_numbers<[1], [0], [0], [1], [0, 0, 1, 1], [], []>} : vector<4x4xf32>, vector<4x16xf32>, vector<4x16xf32> -> vector<4x16xf32>
    %c0_4 = arith.constant 0 : index
    %c0_5 = arith.constant 0 : index
    %4 = vector.load %arg3[%c0_4, %c0_5] : memref<4x1xf32, #tpu.memory_space<vmem>>, vector<4x1xf32>
    %c0_6 = arith.constant 0 : index
    %c0_7 = arith.constant 0 : index
    %5 = vector.load %arg4[%c0_6, %c0_7] : memref<4x1xf32, #tpu.memory_space<vmem>>, vector<4x1xf32>
    %6 = vector.broadcast %5 : vector<4x1xf32> to vector<4x16xf32>
    %7 = arith.addf %3, %6 : vector<4x16xf32>
    %8 = vector.broadcast %4 : vector<4x1xf32> to vector<4x16xf32>
    %9 = arith.mulf %8, %7 : vector<4x16xf32>
    %10 = vector.extract_strided_slice %9 {offsets = [0, 0], sizes = [2, 16], strides = [1, 1]} : vector<4x16xf32> to vector<2x16xf32>
    %11 = vector.extract_strided_slice %9 {offsets = [2, 0], sizes = [2, 16], strides = [1, 1]} : vector<4x16xf32> to vector<2x16xf32>
    %cst_8 = arith.constant 0.000000e+00 : f32
    %12 = vector.broadcast %cst_8 : f32 to vector<2x1xf32>
    %13 = vector.extract_strided_slice %10 {offsets = [0, 0], sizes = [2, 15], strides = [1, 1]} : vector<2x16xf32> to vector<2x15xf32>
    %14 = tpu.concatenate %12, %13 in 1 : vector<2x1xf32>, vector<2x15xf32> -> vector<2x16xf32>
    %cst_9 = arith.constant 0.000000e+00 : f32
    %15 = vector.broadcast %cst_9 : f32 to vector<2x1xf32>
    %16 = vector.extract_strided_slice %10 {offsets = [0, 1], sizes = [2, 15], strides = [1, 1]} : vector<2x16xf32> to vector<2x15xf32>
    %17 = tpu.concatenate %16, %15 in 1 : vector<2x15xf32>, vector<2x1xf32> -> vector<2x16xf32>
    %18 = tpu.concatenate %14, %10, %17 in 0 : vector<2x16xf32>, vector<2x16xf32>, vector<2x16xf32> -> vector<6x16xf32>
    %c0_10 = arith.constant 0 : index
    %c0_11 = arith.constant 0 : index
    %c0_12 = arith.constant 0 : index
    %19 = vector.load %arg5[%c0_10, %c0_11, %c0_12] : memref<1x32x6xf32, #tpu.memory_space<vmem>>, vector<1x32x6xf32>
    %20 = vector.shape_cast %19 : vector<1x32x6xf32> to vector<32x6xf32>
    %cst_13 = arith.constant dense<0.000000e+00> : vector<32x16xf32>
    %21 = tpu.matmul %20, %18, %cst_13 {dimension_numbers = #tpu.dot_dimension_numbers<[1], [0], [0], [1], [0, 0, 1, 1], [], []>} : vector<32x6xf32>, vector<6x16xf32>, vector<32x16xf32> -> vector<32x16xf32>
    %c0_14 = arith.constant 0 : index
    %c0_15 = arith.constant 0 : index
    %c0_16 = arith.constant 0 : index
    %22 = vector.load %arg6[%c0_14, %c0_15, %c0_16] : memref<1x32x1xf32, #tpu.memory_space<vmem>>, vector<1x32x1xf32>
    %23 = vector.shape_cast %22 : vector<1x32x1xf32> to vector<32x1xf32>
    %24 = vector.broadcast %23 : vector<32x1xf32> to vector<32x16xf32>
    %25 = arith.addf %21, %24 : vector<32x16xf32>
    %cst_17 = arith.constant 0.000000e+00 : f32
    %26 = vector.broadcast %cst_17 : f32 to vector<32x16xf32>
    %27 = arith.maximumf %25, %26 : vector<32x16xf32>
    %c0_18 = arith.constant 0 : index
    %c0_19 = arith.constant 0 : index
    %28 = vector.load %arg7[%c0_18, %c0_19] : memref<32x32xf32, #tpu.memory_space<vmem>>, vector<32x32xf32>
    %cst_20 = arith.constant dense<0.000000e+00> : vector<32x16xf32>
    %29 = tpu.matmul %28, %27, %cst_20 {dimension_numbers = #tpu.dot_dimension_numbers<[1], [0], [0], [1], [0, 0, 1, 1], [], []>} : vector<32x32xf32>, vector<32x16xf32>, vector<32x16xf32> -> vector<32x16xf32>
    %c0_21 = arith.constant 0 : index
    %c0_22 = arith.constant 0 : index
    %30 = vector.load %arg8[%c0_21, %c0_22] : memref<32x1xf32, #tpu.memory_space<vmem>>, vector<32x1xf32>
    %31 = vector.broadcast %30 : vector<32x1xf32> to vector<32x16xf32>
    %32 = arith.addf %29, %31 : vector<32x16xf32>
    %cst_23 = arith.constant 0.000000e+00 : f32
    %33 = vector.broadcast %cst_23 : f32 to vector<32x16xf32>
    %34 = arith.maximumf %32, %33 : vector<32x16xf32>
    %cst_24 = arith.constant 0.000000e+00 : f32
    %35 = vector.broadcast %cst_24 : f32 to vector<32x1xf32>
    %36 = vector.extract_strided_slice %34 {offsets = [0, 0], sizes = [32, 15], strides = [1, 1]} : vector<32x16xf32> to vector<32x15xf32>
    %37 = tpu.concatenate %35, %36 in 1 : vector<32x1xf32>, vector<32x15xf32> -> vector<32x16xf32>
    %cst_25 = arith.constant 0.000000e+00 : f32
    %38 = vector.broadcast %cst_25 : f32 to vector<32x1xf32>
    %39 = vector.extract_strided_slice %34 {offsets = [0, 1], sizes = [32, 15], strides = [1, 1]} : vector<32x16xf32> to vector<32x15xf32>
    %40 = tpu.concatenate %39, %38 in 1 : vector<32x15xf32>, vector<32x1xf32> -> vector<32x16xf32>
    %41 = tpu.concatenate %37, %34, %40 in 0 : vector<32x16xf32>, vector<32x16xf32>, vector<32x16xf32> -> vector<96x16xf32>
    %c0_26 = arith.constant 0 : index
    %c0_27 = arith.constant 0 : index
    %42 = vector.load %arg9[%c0_26, %c0_27] : memref<4x96xf32, #tpu.memory_space<vmem>>, vector<4x96xf32>
    %cst_28 = arith.constant dense<0.000000e+00> : vector<4x16xf32>
    %43 = tpu.matmul %42, %41, %cst_28 {dimension_numbers = #tpu.dot_dimension_numbers<[1], [0], [0], [1], [0, 0, 1, 1], [], []>} : vector<4x96xf32>, vector<96x16xf32>, vector<4x16xf32> -> vector<4x16xf32>
    %c0_29 = arith.constant 0 : index
    %c0_30 = arith.constant 0 : index
    %44 = vector.load %arg10[%c0_29, %c0_30] : memref<4x1xf32, #tpu.memory_space<vmem>>, vector<4x1xf32>
    %45 = vector.broadcast %44 : vector<4x1xf32> to vector<4x16xf32>
    %46 = arith.addf %43, %45 : vector<4x16xf32>
    %47 = vector.extract_strided_slice %46 {offsets = [0, 0], sizes = [2, 16], strides = [1, 1]} : vector<4x16xf32> to vector<2x16xf32>
    %cst_31 = arith.constant 2.000000e+00 : f32
    %48 = vector.broadcast %cst_31 : f32 to vector<2x16xf32>
    %49 = arith.addf %47, %48 : vector<2x16xf32>
    %50 = arith.negf %49 : vector<2x16xf32>
    %51 = math.exp %50 : vector<2x16xf32>
    %cst_32 = arith.constant 1.000000e+00 : f32
    %52 = vector.broadcast %cst_32 : f32 to vector<2x16xf32>
    %53 = arith.addf %52, %51 : vector<2x16xf32>
    %54 = arith.divf %52, %53 : vector<2x16xf32>
    %cst_33 = arith.constant 1.000000e-07 : f32
    %55 = vector.broadcast %cst_33 : f32 to vector<2x16xf32>
    %56 = arith.addf %54, %55 : vector<2x16xf32>
    %57 = vector.extract_strided_slice %46 {offsets = [2, 0], sizes = [2, 16], strides = [1, 1]} : vector<4x16xf32> to vector<2x16xf32>
    %58 = arith.addf %11, %57 : vector<2x16xf32>
    %59 = arith.mulf %56, %58 : vector<2x16xf32>
    %60 = tpu.concatenate %10, %59 in 0 : vector<2x16xf32>, vector<2x16xf32> -> vector<4x16xf32>
    %c0_34 = arith.constant 0 : index
    %c0_35 = arith.constant 0 : index
    %c0_36 = arith.constant 0 : index
    %61 = vector.load %arg11[%c0_34, %c0_35, %c0_36] : memref<1x4x16xf32, #tpu.memory_space<vmem>>, vector<1x4x16xf32>
    %62 = vector.shape_cast %61 : vector<1x4x16xf32> to vector<4x16xf32>
    %63 = vector.shape_cast %60 : vector<4x16xf32> to vector<1x4x16xf32>
    tpu.vector_store %arg11[%c0_34, %c0_35, %c0_36], %63 {strides = array<i32>} : memref<1x4x16xf32, #tpu.memory_space<vmem>>, vector<1x4x16xf32>,
    %64 = math.log %56 : vector<2x16xf32>
    %65 = vector.shape_cast %64 : vector<2x16xf32> to vector<1x2x16xf32>
    %cst_37 = arith.constant dense<0.000000e+00> : vector<1xf32>
    %66 = vector.multi_reduction <add>, %65, %cst_37 [1, 2] : vector<1x2x16xf32> to vector<1xf32>
    %67 = vector.shape_cast %66 : vector<1xf32> to vector<1x1x1xf32>
    %68 = vector.extract %67[0, 0, 0] : f32 from vector<1x1x1xf32>
    %69 = vector.broadcast %68 : f32 to vector<1x1xf32>
    %70 = vector.shape_cast %69 : vector<1x1xf32> to vector<1x1x1xf32>
    %c0_38 = arith.constant 0 : index
    %c0_39 = arith.constant 0 : index
    %c0_40 = arith.constant 0 : index
    %71 = vector.load %arg12[%c0_38, %c0_39, %c0_40] : memref<1x1x1xf32, #tpu.memory_space<vmem>>, vector<1x1x1xf32>
    tpu.vector_store %arg12[%c0_38, %c0_39, %c0_40], %70 {strides = array<i32>} : memref<1x1x1xf32, #tpu.memory_space<vmem>>, vector<1x1x1xf32>,
    return
  }
  func.func @transform_0(%arg0: i32) -> (i32, i32, i32) {
    %c0_i32 = arith.constant 0 : i32
    %c0_i32_0 = arith.constant 0 : i32
    %c0_i32_1 = arith.constant 0 : i32
    return %arg0, %c0_i32, %c0_i32_0 : i32, i32, i32
  }
  func.func @transform_1(%arg0: i32) -> (i32, i32) {
    %c0_i32 = arith.constant 0 : i32
    %c0_i32_0 = arith.constant 0 : i32
    %c0_i32_1 = arith.constant 0 : i32
    return %c0_i32, %c0_i32_0 : i32, i32
  }
  func.func @transform_2(%arg0: i32) -> (i32, i32) {
    %c0_i32 = arith.constant 0 : i32
    %c0_i32_0 = arith.constant 0 : i32
    %c0_i32_1 = arith.constant 0 : i32
    return %c0_i32, %c0_i32_0 : i32, i32
  }
  func.func @transform_3(%arg0: i32) -> (i32, i32) {
    %c0_i32 = arith.constant 0 : i32
    %c0_i32_0 = arith.constant 0 : i32
    %c0_i32_1 = arith.constant 0 : i32
    return %c0_i32, %c0_i32_0 : i32, i32
  }
  func.func @transform_4(%arg0: i32) -> (i32, i32, i32) {
    %c0_i32 = arith.constant 0 : i32
    %c0_i32_0 = arith.constant 0 : i32
    %c0_i32_1 = arith.constant 0 : i32
    return %arg0, %c0_i32, %c0_i32_0 : i32, i32, i32
  }
  func.func @transform_5(%arg0: i32) -> (i32, i32, i32) {
    %c0_i32 = arith.constant 0 : i32
    %c0_i32_0 = arith.constant 0 : i32
    %c0_i32_1 = arith.constant 0 : i32
    return %arg0, %c0_i32, %c0_i32_0 : i32, i32, i32
  }
  func.func @transform_6(%arg0: i32) -> (i32, i32) {
    %c0_i32 = arith.constant 0 : i32
    %c0_i32_0 = arith.constant 0 : i32
    %c0_i32_1 = arith.constant 0 : i32
    return %c0_i32, %c0_i32_0 : i32, i32
  }
  func.func @transform_7(%arg0: i32) -> (i32, i32) {
    %c0_i32 = arith.constant 0 : i32
    %c0_i32_0 = arith.constant 0 : i32
    %c0_i32_1 = arith.constant 0 : i32
    return %c0_i32, %c0_i32_0 : i32, i32
  }
  func.func @transform_8(%arg0: i32) -> (i32, i32) {
    %c0_i32 = arith.constant 0 : i32
    %c0_i32_0 = arith.constant 0 : i32
    %c0_i32_1 = arith.constant 0 : i32
    return %c0_i32, %c0_i32_0 : i32, i32
  }
  func.func @transform_9(%arg0: i32) -> (i32, i32) {
    %c0_i32 = arith.constant 0 : i32
    %c0_i32_0 = arith.constant 0 : i32
    %c0_i32_1 = arith.constant 0 : i32
    return %c0_i32, %c0_i32_0 : i32, i32
  }
  func.func @transform_10(%arg0: i32) -> (i32, i32, i32) {
    %c0_i32 = arith.constant 0 : i32
    %c0_i32_0 = arith.constant 0 : i32
    %c0_i32_1 = arith.constant 0 : i32
    return %arg0, %c0_i32, %c0_i32_0 : i32, i32, i32
  }
  func.func @transform_11(%arg0: i32) -> (i32, i32, i32) {
    %c0_i32 = arith.constant 0 : i32
    %c0_i32_0 = arith.constant 0 : i32
    %c0_i32_1 = arith.constant 0 : i32
    return %arg0, %c0_i32, %c0_i32_0 : i32, i32, i32
  }
}

</mosaic_0001>

<bundles_post_ra>
// kernel: model_forward.4
= control target key start
LH: loop header
LB: loop body
LE: loop exit
PB: predicated region body
PF: predicated region fallthrough
CT: control target
= control target key end

     0   :  { %s999_s17 = smov 0   ;;  %s1107_s0 = inlined_call_operand.vmem [shape: f32[2,2,32], index: 0, kind: input, shape index: {}]   ;;  %s1108_s1 = inlined_call_operand.vmem [shape: f32[2,2], index: 1, kind: input, shape index: {}]   ;;  %s1109_s2 = inlined_call_operand.vmem [shape: f32[2,1], index: 2, kind: input, shape index: {}]   ;;  %s1110_s3 = inlined_call_operand.vmem [shape: f32[2,1], index: 3, kind: input, shape index: {}]   ;;  %s1111_s4 = inlined_call_operand.vmem [shape: f32[2,32,3], index: 4, kind: input, shape index: {}]   ;;  %s1112_s5 = inlined_call_operand.vmem [shape: f32[2,32,1], index: 5, kind: input, shape index: {}]   ;;  %s1113_s6 = inlined_call_operand.vmem [shape: f32[32,32], index: 6, kind: input, shape index: {}]   ;;  %s1114_s7 = inlined_call_operand.vmem [shape: f32[32,1], index: 7, kind: input, shape index: {}]   ;;  %s1115_s8 = inlined_call_operand.vmem [shape: f32[2,96], index: 8, kind: input, shape index: {}]   ;;  %s1116_s9 = inlined_call_operand.vmem [shape: f32[2,1], index: 9, kind: input, shape index: {}]   ;;  %s1117_s10 = inlined_call_operand.vmem [shape: f32[2,2,32], index: 10, kind: output, shape index: {0}]   ;;  %s1118_s11 = inlined_call_operand.vmem [shape: f32[2,1,1], index: 11, kind: output, shape index: {1}]  }
   0x1 LB: > { %s862_s18 = sadd.s32 4294967295, %s934_s17   ;;  %p866_p0 = scmp.ge.s32.totalorder %s934_s17, 1  ;;  %s934_s17 = sphi %s999_s17, %s22_s17  }
   0x2   : > { %p359_p1 = scmp.lt.s32.totalorder %s934_s17, 3 }
   0x4   : > { %p360_p2 = pnand %p866_p0, %p359_p1 }
   0x5   : > { %p410_p3 = scmp.lt.s32.totalorder (!%p360_p2), %s862_s18, 1  ;;  %s937_s16 = smov (!%p360_p2), 127  }
   0x6   : > { %363 = sbr.rel (%p360_p2) target bundleno = 1082 (0x43a), region = 60  ;;  %s938_s19 = smov (!%p360_p2), 1  }
   0xb   : > { %v434_v0 = vld [vmem:[%s1110_s3] sm:$0x3]  ;;  %v936_v1 = vmov 0   ;;  %s1120_s18 = smov (!%p410_p3, %s862_s18), 1  ;;  %vm444_vm0 = vcmask 1041408   ;;  %vm440_vm1 = vcmask 15360  }
   0xc   : > { %919 = vset.pattern.permute.xlu0 %v936_v1  ;;  %921 = vset.pattern.permute.xlu1 %v936_v1  ;;  %s867_s21 = sshll.u32 %s1120_s18, 1  ;;  %v432_v2 = vld [vmem:[%s1108_s1] sm:$0x3]  ;;  %s900_s29 = sshll.u32 %s1120_s18, 5  ;;  %v577_v6 = vld [vmem:[%s1114_s7 + $0x10] sm:$0xff]  ;;  %vm483_vm2 = vcmask 252928  }
   0xd   : > { %437 = vperm.xlu0 %919, %v434_v0   ;;  %920 = vset.pattern.permute.xlu2 %v936_v1  ;;  %s413_s24 = scalar_lea.vmem %s1107_s0, %s867_s21  ;;  %v433_v4 = vld [vmem:[%s1109_s2] sm:$0x3]  ;;  %s1029_s13 = scalar_lea.vmem %s1112_s5, %s900_s29  ;;  %v576_v15 = vld [vmem:[%s1114_s7 + $0x8] sm:$0xff]  ;;  %vm478_vm3 = vcmask 7168   ;;  %vm490_vm4 = vcmask 1040384   ;;  %vm534_vm5 = vcmask 1042432  }
   0xe   : > { %v431_v3 = vld [vmem:[%s413_s24] sm:$0x3]  ;;  %v498_v5 = vld [vmem:[%s1029_s13 + $0x8] sm:$0xff]  ;;  %v500_v14 = vld [vmem:[%s1029_s13 + $0x18] sm:$0xff]  ;;  %s418_s25 = scalar_lea.vmem %s1111_s4, %s900_s29  ;;  %vm521_vm6 = vcmask 23552   ;;  %vm599_vm7 = vcmask 261120   ;;  %s427_s28 = scalar_lea.vmem %s1117_s10, %s867_s21 }
   0xf   : > { %873 = vmatpush.msk.msra.mxu0 %vm444_vm0, %v431_v3  ;;  %v497_v12 = vld [vmem:[%s1029_s13] sm:$0xff]  ;;  %518 = vperm.xlu2 %920, %v500_v14   ;;  %v499_v24 = vld [vmem:[%s1029_s13 + $0x10] sm:$0xff]  ;;  %v494_v25 = vld [vmem:[%s418_s25 + $0x8] sm:$0xff]  ;;  %vm688_vm9 = vcmask 785408   ;;  %vm742_vm14 = vcmask 254976   ;;  %vm746_vm15 = vcmask 253952   ;;  %s430_s30 = scalar_lea.vmem %s1118_s11, %s1120_s18 }
  0x10   : > { %874 = vmatmul.msk.f32.vlgmr.msra.gmra.mxu0 %vm440_vm1, %v432_v2  ;;  %v493_v22 = vld [vmem:[%s418_s25] sm:$0xff]  ;;  %v578_v26 = vld [vmem:[%s1114_s7 + $0x18] sm:$0xff]  ;;  %v495_v27 = vld [vmem:[%s418_s25 + $0x10] sm:$0xff] }
  0x11   : > { %v575_v28 = vld [vmem:[%s1114_s7] sm:$0xff]  ;;  %v496_v29 = vld [vmem:[%s418_s25 + $0x18] sm:$0xff]  ;;  %v572_v47 = vld [vmem:[%s1113_s6 + $0x8] sm:$0xff] }
  0x12   : > { %v571_v46 = vld [vmem:[%s1113_s6] sm:$0xff]  ;;  %v573_v48 = vld [vmem:[%s1113_s6 + $0x10] sm:$0xff]  ;;  %v574_v49 = vld [vmem:[%s1113_s6 + $0x18] sm:$0xff] }
  0x13   : > { %v682_v62 = vld [vmem:[%s1116_s9] sm:$0x3]  ;;  %vm888_vm8 = vmneg %vm478_vm3 }
  0x15   : > { %470 = vperm.xlu0 %919, %v433_v4  }
  0x17   : > { %513 = vperm.xlu2 %920, %v499_v24  }
  0x1d   : > { %508 = vperm.xlu0 %919, %v498_v5  }
  0x1f   : > { %596 = vperm.xlu2 %920, %v578_v26  }
  0x25   : > { %591 = vperm.xlu0 %919, %v577_v6  }
  0x27   : > { %581 = vperm.xlu2 %920, %v575_v28  }
  0x69   : > { %v519_v32 = vpop.permute.xlu2 %518 }
  0x71   : > { %v514_v34 = vpop.permute.xlu2 %513 }
  0x79   : > { %v597_v58 = vpop.permute.xlu2 %596 }
  0x7f   : > { %v438_v7 = vpop.permute.xlu0 %437 }
  0x81   : > { %v582_v0 = vpop.permute.xlu2 %581 }
  0x87   : > { %v471_v10 = vpop.permute.xlu0 %470 }
  0x8d   : > { %v465_v8 = vpop.f32.mrf.mxu0 }
  0x8e   : > { %v466_v9 = vadd.f32 %v465_v8, %v438_v7 }
  0x8f   : > { %v509_v38 = vpop.permute.xlu0 %508 }
  0x90   : > { %v1035_v11 = vmul.f32 %v471_v10, %v466_v9  ;;  %v681_v10 = vld [vmem:[%s1115_s8] sm:$0x3] }
  0x92   : > { %480 = vrot.lane.b32.xlu1 %v1035_v11, %s937_s16  ;;  %v485_v18 = vrot.slane %v1035_v11, 7 }
  0x97   : > { %v592_v54 = vpop.permute.xlu0 %591 }
  0x9a   : > { %475 = vrot.lane.b32.xlu1 %v1035_v11, %s938_s19 }
  0xa2   : > { %503 = vperm.xlu1 %921, %v497_v12  }
  0xaa   : > { %586 = vperm.xlu1 %921, %v576_v15  }
 0x104   : > { %v481_v13 = vpop.permute.xlu1 %480 }
 0x105   : > { %v484_v16 = vsel %vm483_vm2, %v481_v13, 0.0 }
 0x106   : > { %v488_v19 = vrot.slane %v484_v16, 6 }
 0x10c   : > { %v476_v17 = vpop.permute.xlu1 %475 }
 0x10d   : > { %v479_v20 = vsel %vm478_vm3, 0.0, %v476_v17 }
 0x10e   : > { %v491_v21 = vsel %vm490_vm4, %v479_v20, %v485_v18 }
 0x10f   : > { %v492_v23 = vsel %vm444_vm0, %v491_v21, %v488_v19  ;;  %vm758_vm0 = vcmask 0  }
 0x110   : > { %875 = vmatpush.msk.msra.mxu1 %vm534_vm5, %v492_v23 }
 0x111   : > { %876 = vmatmul.msk.f32.vlgmr.msra.gmra.mxu1 %vm521_vm6, %v493_v22 }
 0x114   : > { %v504_v39 = vpop.permute.xlu1 %503 }
 0x119   : > { %877 = vmatmul.msk.f32.gmra.mxu1 %vm521_vm6, %v494_v25 }
 0x11c   : > { %v587_v50 = vpop.permute.xlu1 %586 }
 0x121   : > { %878 = vmatmul.msk.f32.gmra.mxu1 %vm521_vm6, %v495_v27 }
 0x129   : > { %879 = vmatmul.msk.f32.gmra.mxu1 %vm521_vm6, %v496_v29 }
 0x18e   : > { %v555_v30 = vpop.f32.mrf.mxu1 }
 0x18f   : > { %v556_v42 = vadd.f32 %v555_v30, %v504_v39 }
 0x191   : > { %v567_v45 = vmax.f32 %v556_v42, 0.0 }
 0x196   : > { %v558_v31 = vpop.f32.mrf.mxu1 }
 0x197   : > { %v559_v40 = vadd.f32 %v558_v31, %v509_v38 }
 0x199   : > { %v568_v44 = vmax.f32 %v559_v40, 0.0 }
 0x19e   : > { %v561_v33 = vpop.f32.mrf.mxu1 }
 0x19f   : > { %v562_v36 = vadd.f32 %v561_v33, %v514_v34 }
 0x1a1   : > { %v569_v43 = vmax.f32 %v562_v36, 0.0 }
 0x1a6   : > { %v564_v35 = vpop.f32.mrf.mxu1 }
 0x1a7   : > { %v565_v37 = vadd.f32 %v564_v35, %v519_v32 }
 0x1a9   : > { %v570_v41 = vmax.f32 %v565_v37, 0.0 }
 0x1ab   : > { %624 = vmatpush.msrb.mxu0 %v570_v41  ;;  %902 = vmatpush.msra.mxu2 %v570_v41 }
 0x1ad   : > { %625 = vmatpush.msrb.mxu0 %v569_v43  ;;  %903 = vmatpush.msra.mxu2 %v569_v43 }
 0x1af   : > { %626 = vmatpush.msrb.mxu0 %v568_v44  ;;  %904 = vmatpush.msra.mxu2 %v568_v44 }
 0x1b1   : > { %627 = vmatpush.msrb.mxu0 %v567_v45  ;;  %905 = vmatpush.msra.mxu2 %v567_v45 }
 0x1b2   : > { %880 = vmatmul.msk.f32.vlgmr.msrb.gmra.mxu0 %vm599_vm7, %v571_v46  ;;  %881 = vmatmul.msk.f32.vlgmr.msra.gmra.mxu2 %vm599_vm7, %v572_v47 }
 0x1ba   : > { %882 = vmatmul.msk.f32.gmra.mxu2 %vm599_vm7, %v573_v48 }
 0x1c2   : > { %883 = vmatmul.msk.f32.gmra.mxu2 %vm599_vm7, %v574_v49 }
 0x22f   : > { %v629_v63 = vpop.f32.mrf.mxu0 }
 0x230   : > { %v630_v1 = vadd.f32 %v629_v63, %v582_v0 }
 0x232   : > { %v641_v2 = vmax.f32 %v630_v1, 0.0 }
 0x235   : > { %v632_v51 = vpop.f32.mrf.mxu2 }
 0x236   : > { %v633_v52 = vadd.f32 %v632_v51, %v587_v50 }
 0x238   : > { %v642_v53 = vmax.f32 %v633_v52, 0.0 }
 0x23a   : > { %667 = vrot.lane.b32.xlu2 %v642_v53, %s937_s16 }
 0x23d   : > { %v635_v55 = vpop.f32.mrf.mxu2 }
 0x23e   : > { %v636_v56 = vadd.f32 %v635_v55, %v592_v54 }
 0x240   : > { %v643_v57 = vmax.f32 %v636_v56, 0.0 }
 0x242   : > { %669 = vrot.lane.b32.xlu1 %v643_v57, %s937_s16  ;;  %653 = vrot.lane.b32.xlu2 %v643_v57, %s938_s19 }
 0x245   : > { %v638_v59 = vpop.f32.mrf.mxu2 }
 0x246   : > { %v639_v60 = vadd.f32 %v638_v59, %v597_v58 }
 0x248   : > { %v644_v61 = vmax.f32 %v639_v60, 0.0 }
 0x24a   : > { %671 = vrot.lane.b32.xlu0 %v644_v61, %s937_s16  ;;  %655 = vrot.lane.b32.xlu1 %v644_v61, %s938_s19 }
 0x24b   : > { %685 = vperm.xlu2 %920, %v682_v62  }
 0x252   : > { %649 = vrot.lane.b32.xlu1 %v641_v2, %s938_s19  ;;  %665 = vrot.lane.b32.xlu0 %v641_v2, %s937_s16 }
 0x25a   : > { %651 = vrot.lane.b32.xlu0 %v642_v53, %s938_s19 }
 0x294   : > { %v668_v5 = vpop.permute.xlu2 %667 }
 0x29c   : > { %v654_v8 = vpop.permute.xlu2 %653 }
 0x2a5   : > { %v686_v13 = vpop.permute.xlu2 %685 }
 0x2b4   : > { %v670_v4 = vpop.permute.xlu1 %669 }
 0x2bc   : > { %v672_v3 = vpop.permute.xlu0 %671  ;;  %v656_v7 = vpop.permute.xlu1 %655 }
 0x2bd   : > { %884 = vmatpush.msk.msra.mxu3 %vm483_vm2, %v672_v3 }
 0x2bf   : > { %885 = vmatpush.msk.msra.mxu3 %vm483_vm2, %v670_v4 }
 0x2c1   : > { %886 = vmatpush.msk.msra.mxu3 %vm483_vm2, %v668_v5 }
 0x2c4   : > { %v666_v6 = vpop.permute.xlu0 %665  ;;  %v650_v12 = vpop.permute.xlu1 %649 }
 0x2c5   : > { %887 = vmatpush.msk.msra.mxu3 %vm483_vm2, %v666_v6 }
 0x2c7   : > { %700 = vmatpush.msra.mxu3 %v644_v61 }
 0x2c9   : > { %701 = vmatpush.msra.mxu3 %v643_v57 }
 0x2cb   : > { %702 = vmatpush.msra.mxu3 %v642_v53 }
 0x2cc   : > { %v652_v9 = vpop.permute.xlu0 %651 }
 0x2cd   : > { %703 = vmatpush.msra.mxu3 %v641_v2 }
 0x2cf   : > { %889 = vmatpush.msk.msra.mxu3 %vm888_vm8, %v656_v7 }
 0x2d1   : > { %891 = vmatpush.msk.msra.mxu3 %vm888_vm8, %v654_v8 }
 0x2d3   : > { %893 = vmatpush.msk.msra.mxu3 %vm888_vm8, %v652_v9 }
 0x2d5   : > { %895 = vmatpush.msk.msra.mxu3 %vm888_vm8, %v650_v12 }
 0x2d6   : > { %896 = vmatmul.msk.f32.vlgmr.msra.gmra.mxu3 %vm688_vm9, %v681_v10 }
 0x359   : > { %v709_v14 = vpop.f32.mrf.mxu3 }
 0x35a   : > { %v710_v15 = vadd.f32 %v709_v14, %v686_v13 }
 0x35c   : > { %v712_v16 = vadd.f32 2.0, %v710_v15  ;;  %v733_v27 = vadd.f32 %v710_v15, %v1035_v11 }
 0x35e   : > { %v897_v17 = vmul.f32 -1.442695, %v712_v16  ;;  %v735_v32 = vrot.slane %v733_v27, 1 }
 0x360   : > { %922 = vpow2.f32 %v897_v17 }
 0x366   : > { %v923_v18 = vpop.eup %922 }
 0x367   : > { %v716_v19 = vadd.f32 1.0, %v923_v18 }
 0x369   : > { %924 = vrcp.f32 %v716_v19  ;;  %v728_v23 = vand.u32 2147483648, %v716_v19  ;;  %v726_v25 = vand.u32 2147483647, %v716_v19  ;;  %vm722_vm11 = vweird.f32 %v716_v19 }
 0x36b   : > { %v729_v28 = vor.u32 1.1754944e-38, %v728_v23  ;;  %vm727_vm13 = vcmp.eq.f32.partialorder %v726_v25, 8.507059e+37 }
 0x36f   : > { %v925_v20 = vpop.eup %924 }
 0x370   : > { %v718_v21 = vmul.f32 %v925_v20, %v716_v19  ;;  %vm723_vm10 = vweird.f32 %v925_v20 }
 0x371   : > { %vm724_vm12 = vmor %vm722_vm11, %vm723_vm10 }
 0x372   : > { %v719_v22 = vsub.f32 1.0, %v718_v21 }
 0x374   : > { %v720_v24 = vmul.f32 %v925_v20, %v719_v22 }
 0x376   : > { %v721_v26 = vadd.f32 %v925_v20, %v720_v24 }
 0x378   : > { %v725_v29 = vsel %vm724_vm12, %v925_v20, %v721_v26 }
 0x379   : > { %v730_v30 = vsel %vm727_vm13, %v729_v28, %v725_v29 }
 0x37a   : > { %v732_v31 = vadd.f32 1e-07, %v730_v30 }
 0x37c   : > { %v737_v33 = vmul.f32 %v735_v32, %v732_v31  ;;  %926 = vlog2.f32 %v732_v31 }
 0x37e   : > { %v739_v34 = vrot.slane %v737_v33, 7 }
 0x380   : > { %v741_v35 = vsel %vm490_vm4, %v1035_v11, %v739_v34 }
 0x381   : > { %743 = vst.msk [vmem:[%s427_s28] sm:$0x3] %vm742_vm14, %v741_v35 }
 0x382   : > { %v927_v36 = vpop.eup %926 }
 0x383   : > { %v745_v37 = vmul.f32 0.6931472, %v927_v36 }
 0x385   : > { %v747_v38 = vsel %vm746_vm15, %v745_v37, 0.0 }
 0x386   : > { %748 = vadd.xlane.f32.xlu0 %v747_v38 }
 0x3f9   : > { %v749_v39 = vpop.xlane.xlu0 %748 }
 0x3fa   : > { %v750_v40 = vrot.slane %v749_v39, 4 }
 0x3fc   : > { %v751_v41 = vadd.f32 %v750_v40, %v749_v39 }
 0x3fe   : > { %v752_v42 = vrot.slane %v751_v41, 2 }
 0x400   : > { %v753_v43 = vadd.f32 %v752_v42, %v751_v41 }
 0x402   : > { %v754_v44 = vrot.slane %v753_v43, 1 }
 0x404   : > { %v755_v45 = vadd.f32 %v754_v44, %v753_v43 }
 0x406   : > { %906 = vpush %v755_v45 }
 0x437   : > { %s907_s12 = spop %906 }
 0x438   : > { %v757_v11 = vstv %s907_s12 }
 0x439   : > { %759 = vst.msk [vmem:[%s430_s30] sm:$0x1] %vm758_vm0, %v757_v11 }
 0x43a PF: > { %s22_s17 = sadd.s32 1, %s934_s17  }
 0x43b   : > { %p19_p4 = scmp.ge.s32.totalorder %s22_s17, 4  }
 0x43d   :  { %21 = sbr.rel (!%p19_p4) target bundleno = 1 (0x1), region = 108 }

// kernel: model_forward.6
= control target key start
LH: loop header
LB: loop body
LE: loop exit
PB: predicated region body
PF: predicated region fallthrough
CT: control target
= control target key end

     0   :  { %s999_s17 = smov 0   ;;  %s1107_s0 = inlined_call_operand.vmem [shape: f32[2,4,16], index: 0, kind: input, shape index: {}]   ;;  %s1108_s1 = inlined_call_operand.vmem [shape: f32[4,4], index: 1, kind: input, shape index: {}]   ;;  %s1109_s2 = inlined_call_operand.vmem [shape: f32[4,1], index: 2, kind: input, shape index: {}]   ;;  %s1110_s3 = inlined_call_operand.vmem [shape: f32[4,1], index: 3, kind: input, shape index: {}]   ;;  %s1111_s4 = inlined_call_operand.vmem [shape: f32[2,32,6], index: 4, kind: input, shape index: {}]   ;;  %s1112_s5 = inlined_call_operand.vmem [shape: f32[2,32,1], index: 5, kind: input, shape index: {}]   ;;  %s1113_s6 = inlined_call_operand.vmem [shape: f32[32,32], index: 6, kind: input, shape index: {}]   ;;  %s1114_s7 = inlined_call_operand.vmem [shape: f32[32,1], index: 7, kind: input, shape index: {}]   ;;  %s1115_s8 = inlined_call_operand.vmem [shape: f32[4,96], index: 8, kind: input, shape index: {}]   ;;  %s1116_s9 = inlined_call_operand.vmem [shape: f32[4,1], index: 9, kind: input, shape index: {}]   ;;  %s1117_s10 = inlined_call_operand.vmem [shape: f32[2,4,16], index: 10, kind: output, shape index: {0}]   ;;  %s1118_s11 = inlined_call_operand.vmem [shape: f32[2,1,1], index: 11, kind: output, shape index: {1}]  }
   0x1 LB: > { %s862_s18 = sadd.s32 4294967295, %s934_s17   ;;  %p866_p0 = scmp.ge.s32.totalorder %s934_s17, 1  ;;  %s934_s17 = sphi %s999_s17, %s22_s17  }
   0x2   : > { %p359_p1 = scmp.lt.s32.totalorder %s934_s17, 3 }
   0x4   : > { %p360_p2 = pnand %p866_p0, %p359_p1 }
   0x5   : > { %p410_p3 = scmp.lt.s32.totalorder (!%p360_p2), %s862_s18, 1  ;;  %s937_s16 = smov (!%p360_p2), 127  }
   0x6   : > { %363 = sbr.rel (%p360_p2) target bundleno = 1082 (0x43a), region = 60  ;;  %s938_s19 = smov (!%p360_p2), 1  }
   0xb   : > { %v434_v0 = vld [vmem:[%s1110_s3] sm:$0xf]  ;;  %v936_v1 = vmov 0   ;;  %s1120_s18 = smov (!%p410_p3, %s862_s18), 1  ;;  %vm444_vm0 = vcmask 1043456   ;;  %vm440_vm1 = vcmask 31744  }
   0xc   : > { %919 = vset.pattern.permute.xlu0 %v936_v1  ;;  %921 = vset.pattern.permute.xlu1 %v936_v1  ;;  %s867_s21 = sshll.u32 %s1120_s18, 2  ;;  %v432_v2 = vld [vmem:[%s1108_s1] sm:$0xf]  ;;  %s900_s29 = sshll.u32 %s1120_s18, 5  ;;  %v577_v6 = vld [vmem:[%s1114_s7 + $0x10] sm:$0xff]  ;;  %vm483_vm2 = vcmask 121856  }
   0xd   : > { %437 = vperm.xlu0 %919, %v434_v0   ;;  %920 = vset.pattern.permute.xlu2 %v936_v1  ;;  %s413_s24 = scalar_lea.vmem %s1107_s0, %s867_s21  ;;  %v433_v4 = vld [vmem:[%s1109_s2] sm:$0xf]  ;;  %s1029_s13 = scalar_lea.vmem %s1112_s5, %s900_s29  ;;  %v576_v15 = vld [vmem:[%s1114_s7 + $0x8] sm:$0xff]  ;;  %vm478_vm3 = vcmask 7168   ;;  %vm490_vm4 = vcmask 1041408   ;;  %vm534_vm5 = vcmask 1045504  }
   0xe   : > { %v431_v3 = vld [vmem:[%s413_s24] sm:$0xf]  ;;  %v498_v5 = vld [vmem:[%s1029_s13 + $0x8] sm:$0xff]  ;;  %v500_v14 = vld [vmem:[%s1029_s13 + $0x18] sm:$0xff]  ;;  %s418_s25 = scalar_lea.vmem %s1111_s4, %s900_s29  ;;  %vm521_vm6 = vcmask 48128   ;;  %vm599_vm7 = vcmask 261120   ;;  %s427_s28 = scalar_lea.vmem %s1117_s10, %s867_s21 }
   0xf   : > { %873 = vmatpush.msk.msra.mxu0 %vm444_vm0, %v431_v3  ;;  %v497_v12 = vld [vmem:[%s1029_s13] sm:$0xff]  ;;  %518 = vperm.xlu2 %920, %v500_v14   ;;  %v499_v24 = vld [vmem:[%s1029_s13 + $0x10] sm:$0xff]  ;;  %v494_v25 = vld [vmem:[%s418_s25 + $0x8] sm:$0xff]  ;;  %vm688_vm9 = vcmask 785408   ;;  %vm742_vm14 = vcmask 125952   ;;  %vm746_vm15 = vcmask 123904   ;;  %s430_s30 = scalar_lea.vmem %s1118_s11, %s1120_s18 }
  0x10   : > { %874 = vmatmul.msk.f32.vlgmr.msra.gmra.mxu0 %vm440_vm1, %v432_v2  ;;  %v493_v22 = vld [vmem:[%s418_s25] sm:$0xff]  ;;  %v578_v26 = vld [vmem:[%s1114_s7 + $0x18] sm:$0xff]  ;;  %v495_v27 = vld [vmem:[%s418_s25 + $0x10] sm:$0xff] }
  0x11   : > { %v575_v28 = vld [vmem:[%s1114_s7] sm:$0xff]  ;;  %v496_v29 = vld [vmem:[%s418_s25 + $0x18] sm:$0xff]  ;;  %v572_v47 = vld [vmem:[%s1113_s6 + $0x8] sm:$0xff] }
  0x12   : > { %v571_v46 = vld [vmem:[%s1113_s6] sm:$0xff]  ;;  %v573_v48 = vld [vmem:[%s1113_s6 + $0x10] sm:$0xff]  ;;  %v574_v49 = vld [vmem:[%s1113_s6 + $0x18] sm:$0xff] }
  0x13   : > { %v682_v62 = vld [vmem:[%s1116_s9] sm:$0xf]  ;;  %vm888_vm8 = vmneg %vm478_vm3 }
  0x15   : > { %470 = vperm.xlu0 %919, %v433_v4  }
  0x17   : > { %513 = vperm.xlu2 %920, %v499_v24  }
  0x1d   : > { %508 = vperm.xlu0 %919, %v498_v5  }
  0x1f   : > { %596 = vperm.xlu2 %920, %v578_v26  }
  0x25   : > { %591 = vperm.xlu0 %919, %v577_v6  }
  0x27   : > { %581 = vperm.xlu2 %920, %v575_v28  }
  0x69   : > { %v519_v32 = vpop.permute.xlu2 %518 }
  0x71   : > { %v514_v34 = vpop.permute.xlu2 %513 }
  0x79   : > { %v597_v58 = vpop.permute.xlu2 %596 }
  0x7f   : > { %v438_v7 = vpop.permute.xlu0 %437 }
  0x81   : > { %v582_v0 = vpop.permute.xlu2 %581 }
  0x87   : > { %v471_v10 = vpop.permute.xlu0 %470 }
  0x8d   : > { %v465_v8 = vpop.f32.mrf.mxu0 }
  0x8e   : > { %v466_v9 = vadd.f32 %v465_v8, %v438_v7 }
  0x8f   : > { %v509_v38 = vpop.permute.xlu0 %508 }
  0x90   : > { %v1035_v11 = vmul.f32 %v471_v10, %v466_v9  ;;  %v681_v10 = vld [vmem:[%s1115_s8] sm:$0xf] }
  0x92   : > { %480 = vrot.lane.b32.xlu1 %v1035_v11, %s937_s16  ;;  %v485_v18 = vrot.slane %v1035_v11, 6 }
  0x97   : > { %v592_v54 = vpop.permute.xlu0 %591 }
  0x9a   : > { %475 = vrot.lane.b32.xlu1 %v1035_v11, %s938_s19 }
  0xa2   : > { %503 = vperm.xlu1 %921, %v497_v12  }
  0xaa   : > { %586 = vperm.xlu1 %921, %v576_v15  }
 0x104   : > { %v481_v13 = vpop.permute.xlu1 %480 }
 0x105   : > { %v484_v16 = vsel %vm483_vm2, %v481_v13, 0.0 }
 0x106   : > { %v488_v19 = vrot.slane %v484_v16, 4 }
 0x10c   : > { %v476_v17 = vpop.permute.xlu1 %475 }
 0x10d   : > { %v479_v20 = vsel %vm478_vm3, 0.0, %v476_v17 }
 0x10e   : > { %v491_v21 = vsel %vm490_vm4, %v479_v20, %v485_v18 }
 0x10f   : > { %v492_v23 = vsel %vm444_vm0, %v491_v21, %v488_v19  ;;  %vm758_vm0 = vcmask 0  }
 0x110   : > { %875 = vmatpush.msk.msra.mxu1 %vm534_vm5, %v492_v23 }
 0x111   : > { %876 = vmatmul.msk.f32.vlgmr.msra.gmra.mxu1 %vm521_vm6, %v493_v22 }
 0x114   : > { %v504_v39 = vpop.permute.xlu1 %503 }
 0x119   : > { %877 = vmatmul.msk.f32.gmra.mxu1 %vm521_vm6, %v494_v25 }
 0x11c   : > { %v587_v50 = vpop.permute.xlu1 %586 }
 0x121   : > { %878 = vmatmul.msk.f32.gmra.mxu1 %vm521_vm6, %v495_v27 }
 0x129   : > { %879 = vmatmul.msk.f32.gmra.mxu1 %vm521_vm6, %v496_v29 }
 0x18e   : > { %v555_v30 = vpop.f32.mrf.mxu1 }
 0x18f   : > { %v556_v42 = vadd.f32 %v555_v30, %v504_v39 }
 0x191   : > { %v567_v45 = vmax.f32 %v556_v42, 0.0 }
 0x196   : > { %v558_v31 = vpop.f32.mrf.mxu1 }
 0x197   : > { %v559_v40 = vadd.f32 %v558_v31, %v509_v38 }
 0x199   : > { %v568_v44 = vmax.f32 %v559_v40, 0.0 }
 0x19e   : > { %v561_v33 = vpop.f32.mrf.mxu1 }
 0x19f   : > { %v562_v36 = vadd.f32 %v561_v33, %v514_v34 }
 0x1a1   : > { %v569_v43 = vmax.f32 %v562_v36, 0.0 }
 0x1a6   : > { %v564_v35 = vpop.f32.mrf.mxu1 }
 0x1a7   : > { %v565_v37 = vadd.f32 %v564_v35, %v519_v32 }
 0x1a9   : > { %v570_v41 = vmax.f32 %v565_v37, 0.0 }
 0x1ab   : > { %624 = vmatpush.msrb.mxu0 %v570_v41  ;;  %902 = vmatpush.msra.mxu2 %v570_v41 }
 0x1ad   : > { %625 = vmatpush.msrb.mxu0 %v569_v43  ;;  %903 = vmatpush.msra.mxu2 %v569_v43 }
 0x1af   : > { %626 = vmatpush.msrb.mxu0 %v568_v44  ;;  %904 = vmatpush.msra.mxu2 %v568_v44 }
 0x1b1   : > { %627 = vmatpush.msrb.mxu0 %v567_v45  ;;  %905 = vmatpush.msra.mxu2 %v567_v45 }
 0x1b2   : > { %880 = vmatmul.msk.f32.vlgmr.msrb.gmra.mxu0 %vm599_vm7, %v571_v46  ;;  %881 = vmatmul.msk.f32.vlgmr.msra.gmra.mxu2 %vm599_vm7, %v572_v47 }
 0x1ba   : > { %882 = vmatmul.msk.f32.gmra.mxu2 %vm599_vm7, %v573_v48 }
 0x1c2   : > { %883 = vmatmul.msk.f32.gmra.mxu2 %vm599_vm7, %v574_v49 }
 0x22f   : > { %v629_v63 = vpop.f32.mrf.mxu0 }
 0x230   : > { %v630_v1 = vadd.f32 %v629_v63, %v582_v0 }
 0x232   : > { %v641_v2 = vmax.f32 %v630_v1, 0.0 }
 0x235   : > { %v632_v51 = vpop.f32.mrf.mxu2 }
 0x236   : > { %v633_v52 = vadd.f32 %v632_v51, %v587_v50 }
 0x238   : > { %v642_v53 = vmax.f32 %v633_v52, 0.0 }
 0x23a   : > { %667 = vrot.lane.b32.xlu2 %v642_v53, %s937_s16 }
 0x23d   : > { %v635_v55 = vpop.f32.mrf.mxu2 }
 0x23e   : > { %v636_v56 = vadd.f32 %v635_v55, %v592_v54 }
 0x240   : > { %v643_v57 = vmax.f32 %v636_v56, 0.0 }
 0x242   : > { %669 = vrot.lane.b32.xlu1 %v643_v57, %s937_s16  ;;  %653 = vrot.lane.b32.xlu2 %v643_v57, %s938_s19 }
 0x245   : > { %v638_v59 = vpop.f32.mrf.mxu2 }
 0x246   : > { %v639_v60 = vadd.f32 %v638_v59, %v597_v58 }
 0x248   : > { %v644_v61 = vmax.f32 %v639_v60, 0.0 }
 0x24a   : > { %671 = vrot.lane.b32.xlu0 %v644_v61, %s937_s16  ;;  %655 = vrot.lane.b32.xlu1 %v644_v61, %s938_s19 }
 0x24b   : > { %685 = vperm.xlu2 %920, %v682_v62  }
 0x252   : > { %649 = vrot.lane.b32.xlu1 %v641_v2, %s938_s19  ;;  %665 = vrot.lane.b32.xlu0 %v641_v2, %s937_s16 }
 0x25a   : > { %651 = vrot.lane.b32.xlu0 %v642_v53, %s938_s19 }
 0x294   : > { %v668_v5 = vpop.permute.xlu2 %667 }
 0x29c   : > { %v654_v8 = vpop.permute.xlu2 %653 }
 0x2a5   : > { %v686_v13 = vpop.permute.xlu2 %685 }
 0x2b4   : > { %v670_v4 = vpop.permute.xlu1 %669 }
 0x2bc   : > { %v672_v3 = vpop.permute.xlu0 %671  ;;  %v656_v7 = vpop.permute.xlu1 %655 }
 0x2bd   : > { %884 = vmatpush.msk.msra.mxu3 %vm483_vm2, %v672_v3 }
 0x2bf   : > { %885 = vmatpush.msk.msra.mxu3 %vm483_vm2, %v670_v4 }
 0x2c1   : > { %886 = vmatpush.msk.msra.mxu3 %vm483_vm2, %v668_v5 }
 0x2c4   : > { %v666_v6 = vpop.permute.xlu0 %665  ;;  %v650_v12 = vpop.permute.xlu1 %649 }
 0x2c5   : > { %887 = vmatpush.msk.msra.mxu3 %vm483_vm2, %v666_v6 }
 0x2c7   : > { %700 = vmatpush.msra.mxu3 %v644_v61 }
 0x2c9   : > { %701 = vmatpush.msra.mxu3 %v643_v57 }
 0x2cb   : > { %702 = vmatpush.msra.mxu3 %v642_v53 }
 0x2cc   : > { %v652_v9 = vpop.permute.xlu0 %651 }
 0x2cd   : > { %703 = vmatpush.msra.mxu3 %v641_v2 }
 0x2cf   : > { %889 = vmatpush.msk.msra.mxu3 %vm888_vm8, %v656_v7 }
 0x2d1   : > { %891 = vmatpush.msk.msra.mxu3 %vm888_vm8, %v654_v8 }
 0x2d3   : > { %893 = vmatpush.msk.msra.mxu3 %vm888_vm8, %v652_v9 }
 0x2d5   : > { %895 = vmatpush.msk.msra.mxu3 %vm888_vm8, %v650_v12 }
 0x2d6   : > { %896 = vmatmul.msk.f32.vlgmr.msra.gmra.mxu3 %vm688_vm9, %v681_v10 }
 0x359   : > { %v709_v14 = vpop.f32.mrf.mxu3 }
 0x35a   : > { %v710_v15 = vadd.f32 %v709_v14, %v686_v13 }
 0x35c   : > { %v712_v16 = vadd.f32 2.0, %v710_v15  ;;  %v733_v27 = vadd.f32 %v710_v15, %v1035_v11 }
 0x35e   : > { %v897_v17 = vmul.f32 -1.442695, %v712_v16  ;;  %v735_v32 = vrot.slane %v733_v27, 2 }
 0x360   : > { %922 = vpow2.f32 %v897_v17 }
 0x366   : > { %v923_v18 = vpop.eup %922 }
 0x367   : > { %v716_v19 = vadd.f32 1.0, %v923_v18 }
 0x369   : > { %924 = vrcp.f32 %v716_v19  ;;  %v728_v23 = vand.u32 2147483648, %v716_v19  ;;  %v726_v25 = vand.u32 2147483647, %v716_v19  ;;  %vm722_vm11 = vweird.f32 %v716_v19 }
 0x36b   : > { %v729_v28 = vor.u32 1.1754944e-38, %v728_v23  ;;  %vm727_vm13 = vcmp.eq.f32.partialorder %v726_v25, 8.507059e+37 }
 0x36f   : > { %v925_v20 = vpop.eup %924 }
 0x370   : > { %v718_v21 = vmul.f32 %v925_v20, %v716_v19  ;;  %vm723_vm10 = vweird.f32 %v925_v20 }
 0x371   : > { %vm724_vm12 = vmor %vm722_vm11, %vm723_vm10 }
 0x372   : > { %v719_v22 = vsub.f32 1.0, %v718_v21 }
 0x374   : > { %v720_v24 = vmul.f32 %v925_v20, %v719_v22 }
 0x376   : > { %v721_v26 = vadd.f32 %v925_v20, %v720_v24 }
 0x378   : > { %v725_v29 = vsel %vm724_vm12, %v925_v20, %v721_v26 }
 0x379   : > { %v730_v30 = vsel %vm727_vm13, %v729_v28, %v725_v29 }
 0x37a   : > { %v732_v31 = vadd.f32 1e-07, %v730_v30 }
 0x37c   : > { %v737_v33 = vmul.f32 %v735_v32, %v732_v31  ;;  %926 = vlog2.f32 %v732_v31 }
 0x37e   : > { %v739_v34 = vrot.slane %v737_v33, 6 }
 0x380   : > { %v741_v35 = vsel %vm490_vm4, %v1035_v11, %v739_v34 }
 0x381   : > { %743 = vst.msk [vmem:[%s427_s28] sm:$0xf] %vm742_vm14, %v741_v35 }
 0x382   : > { %v927_v36 = vpop.eup %926 }
 0x383   : > { %v745_v37 = vmul.f32 0.6931472, %v927_v36 }
 0x385   : > { %v747_v38 = vsel %vm746_vm15, %v745_v37, 0.0 }
 0x386   : > { %748 = vadd.xlane.f32.xlu0 %v747_v38 }
 0x3f9   : > { %v749_v39 = vpop.xlane.xlu0 %748 }
 0x3fa   : > { %v750_v40 = vrot.slane %v749_v39, 4 }
 0x3fc   : > { %v751_v41 = vadd.f32 %v750_v40, %v749_v39 }
 0x3fe   : > { %v752_v42 = vrot.slane %v751_v41, 2 }
 0x400   : > { %v753_v43 = vadd.f32 %v752_v42, %v751_v41 }
 0x402   : > { %v754_v44 = vrot.slane %v753_v43, 1 }
 0x404   : > { %v755_v45 = vadd.f32 %v754_v44, %v753_v43 }
 0x406   : > { %906 = vpush %v755_v45 }
 0x437   : > { %s907_s12 = spop %906 }
 0x438   : > { %v757_v11 = vstv %s907_s12 }
 0x439   : > { %759 = vst.msk [vmem:[%s430_s30] sm:$0x1] %vm758_vm0, %v757_v11 }
 0x43a PF: > { %s22_s17 = sadd.s32 1, %s934_s17  }
 0x43b   : > { %p19_p4 = scmp.ge.s32.totalorder %s22_s17, 4  }
 0x43d   :  { %21 = sbr.rel (!%p19_p4) target bundleno = 1 (0x1), region = 108 }

</bundles_post_ra>
